<compile_context>
chip_gen: v5e
topology: v5e:2x2
jax: 0.10.0
libtpu: 0.0.40
codegen_flags: <defaults>
</compile_context>

<pallas_src>
import jax
import jax.numpy as jnp
from jax import lax
from jax.experimental import pallas as pl
from jax.experimental.pallas import tpu as pltpu


_ROWS_PER_GROUP = 8  # batch rows gathered / reduced / stored per group


def _cdiv(a, b):
    return (a + b - 1) // b


def _round_up(x, m):
    return _cdiv(x, m) * m


# ----------------------------------------------------------------------------
# Kernel 1: resident-table fast path (table lives in VMEM for the whole grid).
# ----------------------------------------------------------------------------
def _make_resident_kernel(num_features, rows_per_group):
    F, R = num_features, rows_per_group

    def kernel(idx_ref, table_ref, out_ref):
        # idx_ref:   SMEM (1, block_b, F) int32 — global rows for this tile
        # table_ref: VMEM (V, E) f32 — whole table, constant block (resident)
        # out_ref:   VMEM (block_b, E) f32
        TM, E = out_ref.shape
        n_groups = TM // R

        def group_body(g, carry):
            base = g * R
            rows = []
            for rr in range(R):                       # static unroll (R = 8)
                def feat_body(f, acc):
                    row = idx_ref[0, base + rr, f]
                    # Exact f32 gather + add from the VMEM-resident table.
                    return acc + table_ref[pl.ds(row, 1), :]
                acc = lax.fori_loop(0, F, feat_body,
                                    jnp.zeros((1, E), jnp.float32),
                                    unroll=min(8, F))
                rows.append(acc)
            # One sublane-dense (R, E) slab store instead of masked (1, E)
            # stores.
            start = pl.multiple_of(g * R, R)
            out_ref[pl.ds(start, R), :] = jnp.concatenate(rows, axis=0)
            return carry

        lax.fori_loop(0, n_groups, group_body, 0)

    return kernel


# ----------------------------------------------------------------------------
# Kernel 2: HBM gather path (table stays in HBM; grouped, pipelined row DMAs).
# ----------------------------------------------------------------------------
def _make_gather_kernel(num_features, rows_per_group):
    F, R = num_features, rows_per_group
    G = F * R  # row DMAs per group (all outstanding before the first wait)

    def kernel(idx_ref, table_hbm, out_ref, gbuf, sem):
        # idx_ref:   SMEM (1, block_b, F) int32 — global rows for this tile
        # table_hbm: HBM  (V, E) f32 (memory_space=pl.ANY, manual DMA)
        # out_ref:   VMEM (block_b, E) f32
        # gbuf:      VMEM (2, F*R, E) f32 — double-buffered gather group
        #            (rows laid out feature-major: row f*R + rr)
        # sem:       DMA semaphores (2,), one per group slot
        TM, E = out_ref.shape
        n_groups = TM // R

        def issue_group(g, slot):
            # All scalar index reads happen here, BEFORE any wait in the same
            # iteration (keeps SMEM sst->sld forwarding alive), and all G row
            # DMAs of the group are issued back-to-back, so up to 2*G copies
            # are in flight across the two slots.
            base = g * R
            for rr in range(R):                       # static unroll
                for f in range(F):                    # static unroll
                    # TODO(synk): for very wide tabular models (F in the
                    # hundreds) switch to a bounded-unroll fori_loop here to
                    # avoid bundle / I-cache bloat.
                    row = idx_ref[0, base + rr, f]
                    pltpu.make_async_copy(
                        table_hbm.at[pl.ds(row, 1), :],
                        gbuf.at[slot, pl.ds(f * R + rr, 1), :],
                        sem.at[slot],
                    ).start()

        def wait_group(slot):
            # Every copy of the group signals sem[slot] and has the identical
            # (1, E) shape, so G matched-shape waits drain exactly this group.
            for _ in range(G):
                pltpu.make_async_copy(
                    table_hbm.at[pl.ds(0, 1), :],
                    gbuf.at[slot, pl.ds(0, 1), :],
                    sem.at[slot],
                ).wait()

        issue_group(0, 0)                             # prime the pipeline

        def group_body(g, carry):
            slot = g & 1

            # Prefetch the next group into the other slot before blocking on
            # this one (double-buffered groups).  Slot `slot` was fully
            # consumed two iterations ago, so reuse is safe.
            @pl.when(g + 1 < n_groups)
            def _():
                issue_group(g + 1, 1 - slot)

            wait_group(slot)

            # Vectorized feature reduction: F slab adds of (R, E), then one
            # sublane-dense (R, E) store.
            acc = jnp.zeros((R, E), jnp.float32)
            for f in range(F):                        # static unroll
                acc = acc + gbuf[slot, pl.ds(f * R, R), :]
            start = pl.multiple_of(g * R, R)
            out_ref[pl.ds(start, R), :] = acc
            return carry

        lax.fori_loop(0, n_groups, group_body, 0)

    return kernel


# ----------------------------------------------------------------------------
# Wrapper / dispatch.
# ----------------------------------------------------------------------------
def categorical_embedding(x_categorical, tables, *, block_b=None,
                          force_path=None):
    """Forward pass of CategoricalEmbedding.

    x_categorical: int array [B, F]; tables: list of F float32 [dim_i, E].
    Returns float32 [B, E] = sum_i tables[i][x_categorical[:, i]].
    force_path: None (auto) | "resident" | "gather"  (for testing).
    """
    F = len(tables)
    E = int(tables[0].shape[1])
    dims = [int(t.shape[0]) for t in tables]
    V = sum(dims)
    B = int(x_categorical.shape[0])
    R = _ROWS_PER_GROUP

    # --- plain-JAX glue: concat tables, local -> global row indices ---------
    big_table = jnp.concatenate([t.astype(jnp.float32) for t in tables], axis=0)
    offsets = jnp.asarray([sum(dims[:i]) for i in range(F)], dtype=jnp.int32)
    g_idx = x_categorical.astype(jnp.int32) + offsets[None, :]          # [B,F]

    # --- batch tiling: >= 2 tiles when B permits (v7x megacore), cap tile ---
    if block_b is None:
        if B >= 2 * R:
            block_b = min(256, _round_up(_cdiv(B, 2), R))
        else:
            block_b = _round_up(max(B, 1), R)
    block_b = _round_up(block_b, R)
    Bp = _round_up(B, block_b)
    num_tiles = Bp // block_b

    if Bp != B:
        # Pad with row 0 (always valid); padded outputs are discarded below.
        g_idx = jnp.concatenate(
            [g_idx, jnp.zeros((Bp - B, F), jnp.int32)], axis=0)
    idx_tiles = g_idx.reshape(num_tiles, block_b, F)

    # --- generation-aware VMEM budget / path dispatch ------------------------
    try:
        phys_vmem = int(pltpu.get_tpu_info().vmem_capacity_bytes)
    except Exception:
        phys_vmem = 64 * 1024 * 1024          # conservative (v7x-sized)
    table_bytes = V * E * 4
    out_tile_bytes = block_b * E * 4
    resident_need = table_bytes + 2 * out_tile_bytes + (2 << 20)
    use_resident = resident_need <= int(0.75 * phys_vmem)
    if force_path == "gather":
        use_resident = False
    elif force_path == "resident":
        use_resident = True

    out_shape = jax.ShapeDtypeStruct((Bp, E), jnp.float32)
    # Per-tile SMEM index block (bounded SMEM use, pipelines with the grid).
    idx_spec = pl.BlockSpec((1, block_b, F), lambda b: (b, 0, 0),
                            memory_space=pltpu.MemorySpace.SMEM)
    out_spec = pl.BlockSpec((block_b, E), lambda b: (b, 0))

    if use_resident:
        # Raise the scoped-VMEM limit above the per-generation default when
        # the resident table needs it (16 MiB v5e / 32 MiB v6e,v7x defaults).
        vmem_limit = None
        if resident_need > (16 << 20):
            vmem_limit = min(int(0.9 * phys_vmem),
                             _round_up(resident_need + (4 << 20), 1 << 20))
        out = pl.pallas_call(
            _make_resident_kernel(F, R),
            out_shape=out_shape,
            grid=(num_tiles,),
            in_specs=[
                idx_spec,
                # Whole table as a constant-index VMEM block -> loaded once,
                # stays resident across the batch grid.
                pl.BlockSpec((V, E), lambda b: (0, 0)),
            ],
            out_specs=out_spec,
            compiler_params=pltpu.CompilerParams(
                dimension_semantics=("parallel",),
                vmem_limit_bytes=vmem_limit),
        )(idx_tiles, big_table)
    else:
        out = pl.pallas_call(
            _make_gather_kernel(F, R),
            out_shape=out_shape,
            grid=(num_tiles,),
            in_specs=[
                idx_spec,
                # Table stays in HBM; rows are DMA-gathered in groups.
                pl.BlockSpec(memory_space=pl.ANY),
            ],
            out_specs=out_spec,
            scratch_shapes=[
                pltpu.VMEM((2, F * R, E), jnp.float32),   # group double-buffer
                pltpu.SemaphoreType.DMA((2,)),
            ],
            compiler_params=pltpu.CompilerParams(
                dimension_semantics=("parallel",)),
        )(idx_tiles, big_table)

    return out[:B]


def _reference(x_categorical, tables):
    # Pure-JAX reference of the PyTorch forward.
    embedded = [jnp.take(t, x_categorical[:, i], axis=0)
                for i, t in enumerate(tables)]
    return jnp.stack(embedded, axis=1).sum(axis=1)


if __name__ == "__main__":
    key = jax.random.PRNGKey(0)

    # ---- Test 1: module-sized config -> resident-table fast path -----------
    categorical_dims = [7, 5, 11, 3]     # F = 4 categorical features
    embedding_dim = 32
    batch = 8

    keys = jax.random.split(key, len(categorical_dims) + 2)
    tables = [
        jax.random.normal(keys[i], (dim, embedding_dim), dtype=jnp.float32)
        for i, dim in enumerate(categorical_dims)
    ]
    ikey = keys[len(categorical_dims)]
    cols = []
    for dim in categorical_dims:
        ikey, sub = jax.random.split(ikey)
        cols.append(jax.random.randint(sub, (batch,), 0, dim, dtype=jnp.int32))
    x_categorical = jnp.stack(cols, axis=1)            # [B, F] int32

    out = jax.block_until_ready(categorical_embedding(x_categorical, tables))
    ref = _reference(x_categorical, tables)
    assert out.shape == (batch, embedding_dim)
    assert jnp.allclose(out, ref, atol=1e-5, rtol=1e-5)

    # ---- Test 2: force the HBM grouped-DMA gather path (large-table path) --
    categorical_dims2 = [9, 6, 5]        # F = 3
    embedding_dim2 = 128
    batch2 = 16                          # -> 2 batch tiles of 8

    keys2 = jax.random.split(keys[len(categorical_dims) + 1],
                             len(categorical_dims2) + 1)
    tables2 = [
        jax.random.normal(keys2[i], (dim, embedding_dim2), dtype=jnp.float32)
        for i, dim in enumerate(categorical_dims2)
    ]
    ikey2 = keys2[len(categorical_dims2)]
    cols2 = []
    for dim in categorical_dims2:
        ikey2, sub = jax.random.split(ikey2)
        cols2.append(jax.random.randint(sub, (batch2,), 0, dim,
                                        dtype=jnp.int32))
    x_categorical2 = jnp.stack(cols2, axis=1)

    out2 = jax.block_until_ready(
        categorical_embedding(x_categorical2, tables2, force_path="gather"))
    ref2 = _reference(x_categorical2, tables2)
    assert out2.shape == (batch2, embedding_dim2)
    assert jnp.allclose(out2, ref2, atol=1e-5, rtol=1e-5)

    print("KERNEL_OK")
</pallas_src>

<mosaic_0001>
module attributes {stable_mosaic.version = 11 : i64} {
  func.func @kernel(%arg0: i32, %arg1: memref<1x8x4xi32, #tpu.memory_space<smem>>, %arg2: memref<26x32xf32, #tpu.memory_space<vmem>>, %arg3: memref<8x32xf32, #tpu.memory_space<vmem>>) attributes {dimension_semantics = [#tpu.dimension_semantics<parallel>], iteration_bounds = array<i64: 1>, scalar_prefetch = 0 : i64, scratch_operands = 0 : i64, tpu.core_type = #tpu.core_type<tc>, window_params = [{transform_indices = @transform_0, window_bounds = array<i64: 1, 8, 4>}, {pipeline_mode = #tpu.pipeline_mode<synchronous>, transform_indices = @transform_1, window_bounds = array<i64: 26, 32>}, {transform_indices = @transform_2, window_bounds = array<i64: 8, 32>}]} {
    %c0_i32 = arith.constant 0 : i32
    %c8_i32 = arith.constant 8 : i32
    %0 = arith.muli %c0_i32, %c8_i32 : i32
    %cst = arith.constant 0.000000e+00 : f32
    %1 = vector.broadcast %cst : f32 to vector<1x32xf32>
    %c0_i32_0 = arith.constant 0 : i32
    %c0_i32_1 = arith.constant 0 : i32
    %2 = arith.addi %0, %c0_i32_1 : i32
    %c0 = arith.constant 0 : index
    %3 = arith.index_cast %2 : i32 to index
    %4 = arith.index_cast %c0_i32_0 : i32 to index
    %5 = memref.load %arg1[%c0, %3, %4] : memref<1x8x4xi32, #tpu.memory_space<smem>>
    %6 = arith.index_cast %5 : i32 to index
    %c0_2 = arith.constant 0 : index
    %7 = vector.load %arg2[%6, %c0_2] : memref<26x32xf32, #tpu.memory_space<vmem>>, vector<1x32xf32>
    %8 = arith.addf %1, %7 : vector<1x32xf32>
    %c1_i32 = arith.constant 1 : i32
    %c0_i32_3 = arith.constant 0 : i32
    %9 = arith.addi %0, %c0_i32_3 : i32
    %c0_4 = arith.constant 0 : index
    %10 = arith.index_cast %9 : i32 to index
    %11 = arith.index_cast %c1_i32 : i32 to index
    %12 = memref.load %arg1[%c0_4, %10, %11] : memref<1x8x4xi32, #tpu.memory_space<smem>>
    %13 = arith.index_cast %12 : i32 to index
    %c0_5 = arith.constant 0 : index
    %14 = vector.load %arg2[%13, %c0_5] : memref<26x32xf32, #tpu.memory_space<vmem>>, vector<1x32xf32>
    %15 = arith.addf %8, %14 : vector<1x32xf32>
    %c2_i32 = arith.constant 2 : i32
    %c0_i32_6 = arith.constant 0 : i32
    %16 = arith.addi %0, %c0_i32_6 : i32
    %c0_7 = arith.constant 0 : index
    %17 = arith.index_cast %16 : i32 to index
    %18 = arith.index_cast %c2_i32 : i32 to index
    %19 = memref.load %arg1[%c0_7, %17, %18] : memref<1x8x4xi32, #tpu.memory_space<smem>>
    %20 = arith.index_cast %19 : i32 to index
    %c0_8 = arith.constant 0 : index
    %21 = vector.load %arg2[%20, %c0_8] : memref<26x32xf32, #tpu.memory_space<vmem>>, vector<1x32xf32>
    %22 = arith.addf %15, %21 : vector<1x32xf32>
    %c3_i32 = arith.constant 3 : i32
    %c0_i32_9 = arith.constant 0 : i32
    %23 = arith.addi %0, %c0_i32_9 : i32
    %c0_10 = arith.constant 0 : index
    %24 = arith.index_cast %23 : i32 to index
    %25 = arith.index_cast %c3_i32 : i32 to index
    %26 = memref.load %arg1[%c0_10, %24, %25] : memref<1x8x4xi32, #tpu.memory_space<smem>>
    %27 = arith.index_cast %26 : i32 to index
    %c0_11 = arith.constant 0 : index
    %28 = vector.load %arg2[%27, %c0_11] : memref<26x32xf32, #tpu.memory_space<vmem>>, vector<1x32xf32>
    %29 = arith.addf %22, %28 : vector<1x32xf32>
    %c4_i32 = arith.constant 4 : i32
    %cst_12 = arith.constant 0.000000e+00 : f32
    %30 = vector.broadcast %cst_12 : f32 to vector<1x32xf32>
    %c0_i32_13 = arith.constant 0 : i32
    %c1_i32_14 = arith.constant 1 : i32
    %31 = arith.addi %0, %c1_i32_14 : i32
    %c0_15 = arith.constant 0 : index
    %32 = arith.index_cast %31 : i32 to index
    %33 = arith.index_cast %c0_i32_13 : i32 to index
    %34 = memref.load %arg1[%c0_15, %32, %33] : memref<1x8x4xi32, #tpu.memory_space<smem>>
    %35 = arith.index_cast %34 : i32 to index
    %c0_16 = arith.constant 0 : index
    %36 = vector.load %arg2[%35, %c0_16] : memref<26x32xf32, #tpu.memory_space<vmem>>, vector<1x32xf32>
    %37 = arith.addf %30, %36 : vector<1x32xf32>
    %c1_i32_17 = arith.constant 1 : i32
    %c1_i32_18 = arith.constant 1 : i32
    %38 = arith.addi %0, %c1_i32_18 : i32
    %c0_19 = arith.constant 0 : index
    %39 = arith.index_cast %38 : i32 to index
    %40 = arith.index_cast %c1_i32_17 : i32 to index
    %41 = memref.load %arg1[%c0_19, %39, %40] : memref<1x8x4xi32, #tpu.memory_space<smem>>
    %42 = arith.index_cast %41 : i32 to index
    %c0_20 = arith.constant 0 : index
    %43 = vector.load %arg2[%42, %c0_20] : memref<26x32xf32, #tpu.memory_space<vmem>>, vector<1x32xf32>
    %44 = arith.addf %37, %43 : vector<1x32xf32>
    %c2_i32_21 = arith.constant 2 : i32
    %c1_i32_22 = arith.constant 1 : i32
    %45 = arith.addi %0, %c1_i32_22 : i32
    %c0_23 = arith.constant 0 : index
    %46 = arith.index_cast %45 : i32 to index
    %47 = arith.index_cast %c2_i32_21 : i32 to index
    %48 = memref.load %arg1[%c0_23, %46, %47] : memref<1x8x4xi32, #tpu.memory_space<smem>>
    %49 = arith.index_cast %48 : i32 to index
    %c0_24 = arith.constant 0 : index
    %50 = vector.load %arg2[%49, %c0_24] : memref<26x32xf32, #tpu.memory_space<vmem>>, vector<1x32xf32>
    %51 = arith.addf %44, %50 : vector<1x32xf32>
    %c3_i32_25 = arith.constant 3 : i32
    %c1_i32_26 = arith.constant 1 : i32
    %52 = arith.addi %0, %c1_i32_26 : i32
    %c0_27 = arith.constant 0 : index
    %53 = arith.index_cast %52 : i32 to index
    %54 = arith.index_cast %c3_i32_25 : i32 to index
    %55 = memref.load %arg1[%c0_27, %53, %54] : memref<1x8x4xi32, #tpu.memory_space<smem>>
    %56 = arith.index_cast %55 : i32 to index
    %c0_28 = arith.constant 0 : index
    %57 = vector.load %arg2[%56, %c0_28] : memref<26x32xf32, #tpu.memory_space<vmem>>, vector<1x32xf32>
    %58 = arith.addf %51, %57 : vector<1x32xf32>
    %c4_i32_29 = arith.constant 4 : i32
    %cst_30 = arith.constant 0.000000e+00 : f32
    %59 = vector.broadcast %cst_30 : f32 to vector<1x32xf32>
    %c0_i32_31 = arith.constant 0 : i32
    %c2_i32_32 = arith.constant 2 : i32
    %60 = arith.addi %0, %c2_i32_32 : i32
    %c0_33 = arith.constant 0 : index
    %61 = arith.index_cast %60 : i32 to index
    %62 = arith.index_cast %c0_i32_31 : i32 to index
    %63 = memref.load %arg1[%c0_33, %61, %62] : memref<1x8x4xi32, #tpu.memory_space<smem>>
    %64 = arith.index_cast %63 : i32 to index
    %c0_34 = arith.constant 0 : index
    %65 = vector.load %arg2[%64, %c0_34] : memref<26x32xf32, #tpu.memory_space<vmem>>, vector<1x32xf32>
    %66 = arith.addf %59, %65 : vector<1x32xf32>
    %c1_i32_35 = arith.constant 1 : i32
    %c2_i32_36 = arith.constant 2 : i32
    %67 = arith.addi %0, %c2_i32_36 : i32
    %c0_37 = arith.constant 0 : index
    %68 = arith.index_cast %67 : i32 to index
    %69 = arith.index_cast %c1_i32_35 : i32 to index
    %70 = memref.load %arg1[%c0_37, %68, %69] : memref<1x8x4xi32, #tpu.memory_space<smem>>
    %71 = arith.index_cast %70 : i32 to index
    %c0_38 = arith.constant 0 : index
    %72 = vector.load %arg2[%71, %c0_38] : memref<26x32xf32, #tpu.memory_space<vmem>>, vector<1x32xf32>
    %73 = arith.addf %66, %72 : vector<1x32xf32>
    %c2_i32_39 = arith.constant 2 : i32
    %c2_i32_40 = arith.constant 2 : i32
    %74 = arith.addi %0, %c2_i32_40 : i32
    %c0_41 = arith.constant 0 : index
    %75 = arith.index_cast %74 : i32 to index
    %76 = arith.index_cast %c2_i32_39 : i32 to index
    %77 = memref.load %arg1[%c0_41, %75, %76] : memref<1x8x4xi32, #tpu.memory_space<smem>>
    %78 = arith.index_cast %77 : i32 to index
    %c0_42 = arith.constant 0 : index
    %79 = vector.load %arg2[%78, %c0_42] : memref<26x32xf32, #tpu.memory_space<vmem>>, vector<1x32xf32>
    %80 = arith.addf %73, %79 : vector<1x32xf32>
    %c3_i32_43 = arith.constant 3 : i32
    %c2_i32_44 = arith.constant 2 : i32
    %81 = arith.addi %0, %c2_i32_44 : i32
    %c0_45 = arith.constant 0 : index
    %82 = arith.index_cast %81 : i32 to index
    %83 = arith.index_cast %c3_i32_43 : i32 to index
    %84 = memref.load %arg1[%c0_45, %82, %83] : memref<1x8x4xi32, #tpu.memory_space<smem>>
    %85 = arith.index_cast %84 : i32 to index
    %c0_46 = arith.constant 0 : index
    %86 = vector.load %arg2[%85, %c0_46] : memref<26x32xf32, #tpu.memory_space<vmem>>, vector<1x32xf32>
    %87 = arith.addf %80, %86 : vector<1x32xf32>
    %c4_i32_47 = arith.constant 4 : i32
    %cst_48 = arith.constant 0.000000e+00 : f32
    %88 = vector.broadcast %cst_48 : f32 to vector<1x32xf32>
    %c0_i32_49 = arith.constant 0 : i32
    %c3_i32_50 = arith.constant 3 : i32
    %89 = arith.addi %0, %c3_i32_50 : i32
    %c0_51 = arith.constant 0 : index
    %90 = arith.index_cast %89 : i32 to index
    %91 = arith.index_cast %c0_i32_49 : i32 to index
    %92 = memref.load %arg1[%c0_51, %90, %91] : memref<1x8x4xi32, #tpu.memory_space<smem>>
    %93 = arith.index_cast %92 : i32 to index
    %c0_52 = arith.constant 0 : index
    %94 = vector.load %arg2[%93, %c0_52] : memref<26x32xf32, #tpu.memory_space<vmem>>, vector<1x32xf32>
    %95 = arith.addf %88, %94 : vector<1x32xf32>
    %c1_i32_53 = arith.constant 1 : i32
    %c3_i32_54 = arith.constant 3 : i32
    %96 = arith.addi %0, %c3_i32_54 : i32
    %c0_55 = arith.constant 0 : index
    %97 = arith.index_cast %96 : i32 to index
    %98 = arith.index_cast %c1_i32_53 : i32 to index
    %99 = memref.load %arg1[%c0_55, %97, %98] : memref<1x8x4xi32, #tpu.memory_space<smem>>
    %100 = arith.index_cast %99 : i32 to index
    %c0_56 = arith.constant 0 : index
    %101 = vector.load %arg2[%100, %c0_56] : memref<26x32xf32, #tpu.memory_space<vmem>>, vector<1x32xf32>
    %102 = arith.addf %95, %101 : vector<1x32xf32>
    %c2_i32_57 = arith.constant 2 : i32
    %c3_i32_58 = arith.constant 3 : i32
    %103 = arith.addi %0, %c3_i32_58 : i32
    %c0_59 = arith.constant 0 : index
    %104 = arith.index_cast %103 : i32 to index
    %105 = arith.index_cast %c2_i32_57 : i32 to index
    %106 = memref.load %arg1[%c0_59, %104, %105] : memref<1x8x4xi32, #tpu.memory_space<smem>>
    %107 = arith.index_cast %106 : i32 to index
    %c0_60 = arith.constant 0 : index
    %108 = vector.load %arg2[%107, %c0_60] : memref<26x32xf32, #tpu.memory_space<vmem>>, vector<1x32xf32>
    %109 = arith.addf %102, %108 : vector<1x32xf32>
    %c3_i32_61 = arith.constant 3 : i32
    %c3_i32_62 = arith.constant 3 : i32
    %110 = arith.addi %0, %c3_i32_62 : i32
    %c0_63 = arith.constant 0 : index
    %111 = arith.index_cast %110 : i32 to index
    %112 = arith.index_cast %c3_i32_61 : i32 to index
    %113 = memref.load %arg1[%c0_63, %111, %112] : memref<1x8x4xi32, #tpu.memory_space<smem>>
    %114 = arith.index_cast %113 : i32 to index
    %c0_64 = arith.constant 0 : index
    %115 = vector.load %arg2[%114, %c0_64] : memref<26x32xf32, #tpu.memory_space<vmem>>, vector<1x32xf32>
    %116 = arith.addf %109, %115 : vector<1x32xf32>
    %c4_i32_65 = arith.constant 4 : i32
    %cst_66 = arith.constant 0.000000e+00 : f32
    %117 = vector.broadcast %cst_66 : f32 to vector<1x32xf32>
    %c0_i32_67 = arith.constant 0 : i32
    %c4_i32_68 = arith.constant 4 : i32
    %118 = arith.addi %0, %c4_i32_68 : i32
    %c0_69 = arith.constant 0 : index
    %119 = arith.index_cast %118 : i32 to index
    %120 = arith.index_cast %c0_i32_67 : i32 to index
    %121 = memref.load %arg1[%c0_69, %119, %120] : memref<1x8x4xi32, #tpu.memory_space<smem>>
    %122 = arith.index_cast %121 : i32 to index
    %c0_70 = arith.constant 0 : index
    %123 = vector.load %arg2[%122, %c0_70] : memref<26x32xf32, #tpu.memory_space<vmem>>, vector<1x32xf32>
    %124 = arith.addf %117, %123 : vector<1x32xf32>
    %c1_i32_71 = arith.constant 1 : i32
    %c4_i32_72 = arith.constant 4 : i32
    %125 = arith.addi %0, %c4_i32_72 : i32
    %c0_73 = arith.constant 0 : index
    %126 = arith.index_cast %125 : i32 to index
    %127 = arith.index_cast %c1_i32_71 : i32 to index
    %128 = memref.load %arg1[%c0_73, %126, %127] : memref<1x8x4xi32, #tpu.memory_space<smem>>
    %129 = arith.index_cast %128 : i32 to index
    %c0_74 = arith.constant 0 : index
    %130 = vector.load %arg2[%129, %c0_74] : memref<26x32xf32, #tpu.memory_space<vmem>>, vector<1x32xf32>
    %131 = arith.addf %124, %130 : vector<1x32xf32>
    %c2_i32_75 = arith.constant 2 : i32
    %c4_i32_76 = arith.constant 4 : i32
    %132 = arith.addi %0, %c4_i32_76 : i32
    %c0_77 = arith.constant 0 : index
    %133 = arith.index_cast %132 : i32 to index
    %134 = arith.index_cast %c2_i32_75 : i32 to index
    %135 = memref.load %arg1[%c0_77, %133, %134] : memref<1x8x4xi32, #tpu.memory_space<smem>>
    %136 = arith.index_cast %135 : i32 to index
    %c0_78 = arith.constant 0 : index
    %137 = vector.load %arg2[%136, %c0_78] : memref<26x32xf32, #tpu.memory_space<vmem>>, vector<1x32xf32>
    %138 = arith.addf %131, %137 : vector<1x32xf32>
    %c3_i32_79 = arith.constant 3 : i32
    %c4_i32_80 = arith.constant 4 : i32
    %139 = arith.addi %0, %c4_i32_80 : i32
    %c0_81 = arith.constant 0 : index
    %140 = arith.index_cast %139 : i32 to index
    %141 = arith.index_cast %c3_i32_79 : i32 to index
    %142 = memref.load %arg1[%c0_81, %140, %141] : memref<1x8x4xi32, #tpu.memory_space<smem>>
    %143 = arith.index_cast %142 : i32 to index
    %c0_82 = arith.constant 0 : index
    %144 = vector.load %arg2[%143, %c0_82] : memref<26x32xf32, #tpu.memory_space<vmem>>, vector<1x32xf32>
    %145 = arith.addf %138, %144 : vector<1x32xf32>
    %c4_i32_83 = arith.constant 4 : i32
    %cst_84 = arith.constant 0.000000e+00 : f32
    %146 = vector.broadcast %cst_84 : f32 to vector<1x32xf32>
    %c0_i32_85 = arith.constant 0 : i32
    %c5_i32 = arith.constant 5 : i32
    %147 = arith.addi %0, %c5_i32 : i32
    %c0_86 = arith.constant 0 : index
    %148 = arith.index_cast %147 : i32 to index
    %149 = arith.index_cast %c0_i32_85 : i32 to index
    %150 = memref.load %arg1[%c0_86, %148, %149] : memref<1x8x4xi32, #tpu.memory_space<smem>>
    %151 = arith.index_cast %150 : i32 to index
    %c0_87 = arith.constant 0 : index
    %152 = vector.load %arg2[%151, %c0_87] : memref<26x32xf32, #tpu.memory_space<vmem>>, vector<1x32xf32>
    %153 = arith.addf %146, %152 : vector<1x32xf32>
    %c1_i32_88 = arith.constant 1 : i32
    %c5_i32_89 = arith.constant 5 : i32
    %154 = arith.addi %0, %c5_i32_89 : i32
    %c0_90 = arith.constant 0 : index
    %155 = arith.index_cast %154 : i32 to index
    %156 = arith.index_cast %c1_i32_88 : i32 to index
    %157 = memref.load %arg1[%c0_90, %155, %156] : memref<1x8x4xi32, #tpu.memory_space<smem>>
    %158 = arith.index_cast %157 : i32 to index
    %c0_91 = arith.constant 0 : index
    %159 = vector.load %arg2[%158, %c0_91] : memref<26x32xf32, #tpu.memory_space<vmem>>, vector<1x32xf32>
    %160 = arith.addf %153, %159 : vector<1x32xf32>
    %c2_i32_92 = arith.constant 2 : i32
    %c5_i32_93 = arith.constant 5 : i32
    %161 = arith.addi %0, %c5_i32_93 : i32
    %c0_94 = arith.constant 0 : index
    %162 = arith.index_cast %161 : i32 to index
    %163 = arith.index_cast %c2_i32_92 : i32 to index
    %164 = memref.load %arg1[%c0_94, %162, %163] : memref<1x8x4xi32, #tpu.memory_space<smem>>
    %165 = arith.index_cast %164 : i32 to index
    %c0_95 = arith.constant 0 : index
    %166 = vector.load %arg2[%165, %c0_95] : memref<26x32xf32, #tpu.memory_space<vmem>>, vector<1x32xf32>
    %167 = arith.addf %160, %166 : vector<1x32xf32>
    %c3_i32_96 = arith.constant 3 : i32
    %c5_i32_97 = arith.constant 5 : i32
    %168 = arith.addi %0, %c5_i32_97 : i32
    %c0_98 = arith.constant 0 : index
    %169 = arith.index_cast %168 : i32 to index
    %170 = arith.index_cast %c3_i32_96 : i32 to index
    %171 = memref.load %arg1[%c0_98, %169, %170] : memref<1x8x4xi32, #tpu.memory_space<smem>>
    %172 = arith.index_cast %171 : i32 to index
    %c0_99 = arith.constant 0 : index
    %173 = vector.load %arg2[%172, %c0_99] : memref<26x32xf32, #tpu.memory_space<vmem>>, vector<1x32xf32>
    %174 = arith.addf %167, %173 : vector<1x32xf32>
    %c4_i32_100 = arith.constant 4 : i32
    %cst_101 = arith.constant 0.000000e+00 : f32
    %175 = vector.broadcast %cst_101 : f32 to vector<1x32xf32>
    %c0_i32_102 = arith.constant 0 : i32
    %c6_i32 = arith.constant 6 : i32
    %176 = arith.addi %0, %c6_i32 : i32
    %c0_103 = arith.constant 0 : index
    %177 = arith.index_cast %176 : i32 to index
    %178 = arith.index_cast %c0_i32_102 : i32 to index
    %179 = memref.load %arg1[%c0_103, %177, %178] : memref<1x8x4xi32, #tpu.memory_space<smem>>
    %180 = arith.index_cast %179 : i32 to index
    %c0_104 = arith.constant 0 : index
    %181 = vector.load %arg2[%180, %c0_104] : memref<26x32xf32, #tpu.memory_space<vmem>>, vector<1x32xf32>
    %182 = arith.addf %175, %181 : vector<1x32xf32>
    %c1_i32_105 = arith.constant 1 : i32
    %c6_i32_106 = arith.constant 6 : i32
    %183 = arith.addi %0, %c6_i32_106 : i32
    %c0_107 = arith.constant 0 : index
    %184 = arith.index_cast %183 : i32 to index
    %185 = arith.index_cast %c1_i32_105 : i32 to index
    %186 = memref.load %arg1[%c0_107, %184, %185] : memref<1x8x4xi32, #tpu.memory_space<smem>>
    %187 = arith.index_cast %186 : i32 to index
    %c0_108 = arith.constant 0 : index
    %188 = vector.load %arg2[%187, %c0_108] : memref<26x32xf32, #tpu.memory_space<vmem>>, vector<1x32xf32>
    %189 = arith.addf %182, %188 : vector<1x32xf32>
    %c2_i32_109 = arith.constant 2 : i32
    %c6_i32_110 = arith.constant 6 : i32
    %190 = arith.addi %0, %c6_i32_110 : i32
    %c0_111 = arith.constant 0 : index
    %191 = arith.index_cast %190 : i32 to index
    %192 = arith.index_cast %c2_i32_109 : i32 to index
    %193 = memref.load %arg1[%c0_111, %191, %192] : memref<1x8x4xi32, #tpu.memory_space<smem>>
    %194 = arith.index_cast %193 : i32 to index
    %c0_112 = arith.constant 0 : index
    %195 = vector.load %arg2[%194, %c0_112] : memref<26x32xf32, #tpu.memory_space<vmem>>, vector<1x32xf32>
    %196 = arith.addf %189, %195 : vector<1x32xf32>
    %c3_i32_113 = arith.constant 3 : i32
    %c6_i32_114 = arith.constant 6 : i32
    %197 = arith.addi %0, %c6_i32_114 : i32
    %c0_115 = arith.constant 0 : index
    %198 = arith.index_cast %197 : i32 to index
    %199 = arith.index_cast %c3_i32_113 : i32 to index
    %200 = memref.load %arg1[%c0_115, %198, %199] : memref<1x8x4xi32, #tpu.memory_space<smem>>
    %201 = arith.index_cast %200 : i32 to index
    %c0_116 = arith.constant 0 : index
    %202 = vector.load %arg2[%201, %c0_116] : memref<26x32xf32, #tpu.memory_space<vmem>>, vector<1x32xf32>
    %203 = arith.addf %196, %202 : vector<1x32xf32>
    %c4_i32_117 = arith.constant 4 : i32
    %cst_118 = arith.constant 0.000000e+00 : f32
    %204 = vector.broadcast %cst_118 : f32 to vector<1x32xf32>
    %c0_i32_119 = arith.constant 0 : i32
    %c7_i32 = arith.constant 7 : i32
    %205 = arith.addi %0, %c7_i32 : i32
    %c0_120 = arith.constant 0 : index
    %206 = arith.index_cast %205 : i32 to index
    %207 = arith.index_cast %c0_i32_119 : i32 to index
    %208 = memref.load %arg1[%c0_120, %206, %207] : memref<1x8x4xi32, #tpu.memory_space<smem>>
    %209 = arith.index_cast %208 : i32 to index
    %c0_121 = arith.constant 0 : index
    %210 = vector.load %arg2[%209, %c0_121] : memref<26x32xf32, #tpu.memory_space<vmem>>, vector<1x32xf32>
    %211 = arith.addf %204, %210 : vector<1x32xf32>
    %c1_i32_122 = arith.constant 1 : i32
    %c7_i32_123 = arith.constant 7 : i32
    %212 = arith.addi %0, %c7_i32_123 : i32
    %c0_124 = arith.constant 0 : index
    %213 = arith.index_cast %212 : i32 to index
    %214 = arith.index_cast %c1_i32_122 : i32 to index
    %215 = memref.load %arg1[%c0_124, %213, %214] : memref<1x8x4xi32, #tpu.memory_space<smem>>
    %216 = arith.index_cast %215 : i32 to index
    %c0_125 = arith.constant 0 : index
    %217 = vector.load %arg2[%216, %c0_125] : memref<26x32xf32, #tpu.memory_space<vmem>>, vector<1x32xf32>
    %218 = arith.addf %211, %217 : vector<1x32xf32>
    %c2_i32_126 = arith.constant 2 : i32
    %c7_i32_127 = arith.constant 7 : i32
    %219 = arith.addi %0, %c7_i32_127 : i32
    %c0_128 = arith.constant 0 : index
    %220 = arith.index_cast %219 : i32 to index
    %221 = arith.index_cast %c2_i32_126 : i32 to index
    %222 = memref.load %arg1[%c0_128, %220, %221] : memref<1x8x4xi32, #tpu.memory_space<smem>>
    %223 = arith.index_cast %222 : i32 to index
    %c0_129 = arith.constant 0 : index
    %224 = vector.load %arg2[%223, %c0_129] : memref<26x32xf32, #tpu.memory_space<vmem>>, vector<1x32xf32>
    %225 = arith.addf %218, %224 : vector<1x32xf32>
    %c3_i32_130 = arith.constant 3 : i32
    %c7_i32_131 = arith.constant 7 : i32
    %226 = arith.addi %0, %c7_i32_131 : i32
    %c0_132 = arith.constant 0 : index
    %227 = arith.index_cast %226 : i32 to index
    %228 = arith.index_cast %c3_i32_130 : i32 to index
    %229 = memref.load %arg1[%c0_132, %227, %228] : memref<1x8x4xi32, #tpu.memory_space<smem>>
    %230 = arith.index_cast %229 : i32 to index
    %c0_133 = arith.constant 0 : index
    %231 = vector.load %arg2[%230, %c0_133] : memref<26x32xf32, #tpu.memory_space<vmem>>, vector<1x32xf32>
    %232 = arith.addf %225, %231 : vector<1x32xf32>
    %c4_i32_134 = arith.constant 4 : i32
    %c8_i32_135 = arith.constant 8 : i32
    %233 = arith.muli %c0_i32, %c8_i32_135 : i32
    %234 = tpu.assume_multiple %233, 8 : i32
    %235 = tpu.concatenate %29, %58, %87, %116, %145, %174, %203, %232 in 0 : vector<1x32xf32>, vector<1x32xf32>, vector<1x32xf32>, vector<1x32xf32>, vector<1x32xf32>, vector<1x32xf32>, vector<1x32xf32>, vector<1x32xf32> -> vector<8x32xf32>
    %236 = arith.index_cast %234 : i32 to index
    %c0_136 = arith.constant 0 : index
    %237 = vector.load %arg3[%236, %c0_136] : memref<8x32xf32, #tpu.memory_space<vmem>>, vector<8x32xf32>
    tpu.vector_store %arg3[%236, %c0_136], %235 {strides = array<i32>} : memref<8x32xf32, #tpu.memory_space<vmem>>, vector<8x32xf32>,
    %c1_i32_137 = arith.constant 1 : i32
    return
  }
  func.func @transform_0(%arg0: i32) -> (i32, i32, i32) {
    %c0_i32 = arith.constant 0 : i32
    %c0_i32_0 = arith.constant 0 : i32
    %c0_i32_1 = arith.constant 0 : i32
    return %arg0, %c0_i32, %c0_i32_0 : i32, i32, i32
  }
  func.func @transform_1(%arg0: i32) -> (i32, i32) {
    %c0_i32 = arith.constant 0 : i32
    %c0_i32_0 = arith.constant 0 : i32
    %c0_i32_1 = arith.constant 0 : i32
    return %c0_i32, %c0_i32_0 : i32, i32
  }
  func.func @transform_2(%arg0: i32) -> (i32, i32) {
    %c0_i32 = arith.constant 0 : i32
    %c0_i32_0 = arith.constant 0 : i32
    return %arg0, %c0_i32 : i32, i32
  }
}

</mosaic_0001>

<bundles_post_ra>
// kernel: tpu_custom_call.1
= control target key start
LH: loop header
LB: loop body
LE: loop exit
PB: predicated region body
PF: predicated region fallthrough
CT: control target
= control target key end

     0   :  { %7 = vsyncpa [#allocation5], 0  ;;  %s438_s0 = inlined_call_operand.vmem [shape: s32[1,8,4], index: 0, kind: input, shape index: {}]   ;;  %s439_s1 = inlined_call_operand.hbm [shape: f32[26,32], index: 1, kind: input, shape index: {}]   ;;  %s440_s2 = inlined_call_operand.hbm [shape: f32[8,32], index: 2, kind: output, shape index: {}]  }
   0x1   :  { %8 = vsyncpa [#allocation3], 0 }
   0x2   :  { %9 = vsyncpa [#allocation4], 0  ;;  %s15_s11 = sshll.u32 %s438_s0, 4  ;;  %s23_s14 = sshll.u32 %s439_s1, 4  ;;  %s16_s11 = int_to_ptr.vmem [resolvable:$true] %s15_s11  ;;  %s24_s14 = int_to_ptr.hbm [resolvable:$true] %s23_s14 }
   0x3   :  { %s358_s15 = smov [#allocation2]   ;;  %s359_s16 = smov [#allocation6]  }
   0x4   :  { %18 = dma.vmem_to_smem %s16_s11, 128, %s358_s15, [#allocation5]  }
   0x5   :  { %s25_s17 = sshll.u32 %s359_s16, 4  ;;  %s360_s18 = smov 128   ;;  %s26_s17 = int_to_ptr.vmem [resolvable:$true] %s25_s17 }
   0x6   :  { %s361_s19 = smov 8  }
   0x7   :  { %31 = dma.hbm_to_vmem [thread:$0]  %s24_s14, 512, %s26_s17, [#allocation3], %s360_s18, %s360_s18, %s361_s19  }
   0x8   :  { %352 = dma.done.wait [#allocation5], 128  }
   0x9   :  { %353 = vsyncadd [#allocation5], 4294967168 }
   0xa   :  { %354 = dma.done.wait [#allocation3], 512  }
   0xb   :  { %355 = vsyncadd [#allocation3], 4294966784 }
   0xc   :  { %40 = sfence }
   0xd   :  { %s41_s0 = sld [smem:[#allocation2]]  ;;  %vm190_vm0 = vcmask 1040384   ;;  %vm192_vm1 = vcmask 1041408   ;;  %vm194_vm2 = vcmask 1042432   ;;  %vm196_vm3 = vcmask 1043456  }
   0xe   :  { %s256_s20 = sld [smem:[#allocation2 + $0x1]]  ;;  %vm198_vm4 = vcmask 1044480   ;;  %vm200_vm5 = vcmask 1045504   ;;  %vm202_vm6 = vcmask 1046528   ;;  %vm204_vm7 = vcmask 261120  }
   0xf   :  { %s257_s21 = sld [smem:[#allocation2 + $0x2]] }
  0x10   :  { %s384_s22 = sld [smem:[#allocation2 + $0x3]] }
  0x11   :  { %s259_s1 = sld [smem:[#allocation2 + $0x80]] }
  0x12   :  { %s260_s23 = sld [smem:[#allocation2 + $0x81]] }
  0x13   :  { %s261_s24 = sld [smem:[#allocation2 + $0x82]]  ;;  %s42_s28 = scalar_lea.vmem [#allocation6], %s41_s0 }
  0x14   :  { %s262_s25 = sld [smem:[#allocation2 + $0x83]]  ;;  %v43_v0 = vld [vmem:[%s42_s28] sm:$0x1]  ;;  %s46_s29 = scalar_lea.vmem [#allocation6], %s256_s20 }
  0x15   :  { %s263_s26 = sld [smem:[#allocation2 + $0x100]]  ;;  %v47_v1 = vld [vmem:[%s46_s29] sm:$0x1]  ;;  %s50_s9 = scalar_lea.vmem [#allocation6], %s257_s21 }
  0x16   :  { %s264_s27 = sld [smem:[#allocation2 + $0x101]]  ;;  %v51_v6 = vld [vmem:[%s50_s9] sm:$0x1]  ;;  %v48_v8 = vadd.f32 %v47_v1, %v43_v0  ;;  %s54_s18 = scalar_lea.vmem [#allocation6], %s384_s22 }
  0x17   :  { %s265_s30 = sld [smem:[#allocation2 + $0x102]]  ;;  %s58_s3 = scalar_lea.vmem [#allocation6], %s259_s1  ;;  %v55_v14 = vld [vmem:[%s54_s18] sm:$0x1] }
  0x18   :  { %v59_v2 = vld [vmem:[%s58_s3] sm:$0x1]  ;;  %s266_s4 = sld [smem:[#allocation2 + $0x103]]  ;;  %s62_s5 = scalar_lea.vmem [#allocation6], %s260_s23  ;;  %v52_v16 = vadd.f32 %v51_v6, %v48_v8 }
  0x19   :  { %v63_v3 = vld [vmem:[%s62_s5] sm:$0x1]  ;;  %s386_s6 = sld [smem:[#allocation2 + $0x180]]  ;;  %s66_s7 = scalar_lea.vmem [#allocation6], %s261_s24 }
  0x1a   :  { %v64_v4 = vadd.f32 %v63_v3, %v59_v2  ;;  %v67_v5 = vld [vmem:[%s66_s7] sm:$0x1]  ;;  %s388_s8 = sld [smem:[#allocation2 + $0x181]]  ;;  %s70_s10 = scalar_lea.vmem [#allocation6], %s262_s25  ;;  %v56_v25 = vadd.f32 %v55_v14, %v52_v16 }
  0x1b   :  { %v71_v7 = vld [vmem:[%s70_s10] sm:$0x1]  ;;  %s390_s11 = sld [smem:[#allocation2 + $0x182]]  ;;  %s74_s12 = scalar_lea.vmem [#allocation6], %s263_s26 }
  0x1c   :  { %v68_v9 = vadd.f32 %v67_v5, %v64_v4  ;;  %v75_v10 = vld [vmem:[%s74_s12] sm:$0x1]  ;;  %s270_s13 = sld [smem:[#allocation2 + $0x183]]  ;;  %s78_s14 = scalar_lea.vmem [#allocation6], %s264_s27 }
  0x1d   :  { %v79_v11 = vld [vmem:[%s78_s14] sm:$0x1]  ;;  %s392_s15 = sld [smem:[#allocation2 + $0x200]]  ;;  %s82_s16 = scalar_lea.vmem [#allocation6], %s265_s30 }
  0x1e   :  { %v80_v12 = vadd.f32 %v79_v11, %v75_v10  ;;  %v83_v13 = vld [vmem:[%s82_s16] sm:$0x1]  ;;  %s394_s17 = sld [smem:[#allocation2 + $0x201]]  ;;  %s86_s19 = scalar_lea.vmem [#allocation6], %s266_s4  ;;  %v72_v17 = vadd.f32 %v71_v7, %v68_v9 }
  0x1f   :  { %v87_v15 = vld [vmem:[%s86_s19] sm:$0x1]  ;;  %s397_s0 = sld [smem:[#allocation2 + $0x202]]  ;;  %s90_s20 = scalar_lea.vmem [#allocation6], %s386_s6 }
  0x20   :  { %v84_v18 = vadd.f32 %v83_v13, %v80_v12  ;;  %v91_v19 = vld [vmem:[%s90_s20] sm:$0x1]  ;;  %s274_s21 = sld [smem:[#allocation2 + $0x203]]  ;;  %s94_s1 = scalar_lea.vmem [#allocation6], %s388_s8  ;;  %v170_v28 = vrot.slane %v72_v17, 7 }
  0x21   :  { %v95_v20 = vld [vmem:[%s94_s1] sm:$0x1]  ;;  %s401_s23 = sld [smem:[#allocation2 + $0x280]]  ;;  %s98_s24 = scalar_lea.vmem [#allocation6], %s390_s11 }
  0x22   :  { %v96_v21 = vadd.f32 %v95_v20, %v91_v19  ;;  %v99_v22 = vld [vmem:[%s98_s24] sm:$0x1]  ;;  %s404_s22 = sld [smem:[#allocation2 + $0x281]]  ;;  %v88_v23 = vadd.f32 %v87_v15, %v84_v18  ;;  %s102_s25 = scalar_lea.vmem [#allocation6], %s270_s13  ;;  %v191_v37 = vsel %vm190_vm0, %v56_v25, %v170_v28 }
  0x23   :  { %v103_v24 = vld [vmem:[%s102_s25] sm:$0x1]  ;;  %s406_s26 = sld [smem:[#allocation2 + $0x282]]  ;;  %s106_s27 = scalar_lea.vmem [#allocation6], %s392_s15 }
  0x24   :  { %v100_v26 = vadd.f32 %v99_v22, %v96_v21  ;;  %v107_v27 = vld [vmem:[%s106_s27] sm:$0x1]  ;;  %s409_s28 = sld [smem:[#allocation2 + $0x283]]  ;;  %s110_s29 = scalar_lea.vmem [#allocation6], %s394_s17  ;;  %v173_v34 = vrot.slane %v88_v23, 6 }
  0x25   :  { %v111_v29 = vld [vmem:[%s110_s29] sm:$0x1]  ;;  %s412_s30 = sld [smem:[#allocation2 + $0x300]]  ;;  %s114_s3 = scalar_lea.vmem [#allocation6], %s397_s0 }
  0x26   :  { %v104_v30 = vadd.f32 %v103_v24, %v100_v26  ;;  %v112_v31 = vadd.f32 %v111_v29, %v107_v27  ;;  %v115_v32 = vld [vmem:[%s114_s3] sm:$0x1]  ;;  %s415_s4 = sld [smem:[#allocation2 + $0x301]]  ;;  %s118_s5 = scalar_lea.vmem [#allocation6], %s274_s21  ;;  %v193_v44 = vsel %vm192_vm1, %v191_v37, %v173_v34 }
  0x27   :  { %v119_v33 = vld [vmem:[%s118_s5] sm:$0x1]  ;;  %s417_s6 = sld [smem:[#allocation2 + $0x302]]  ;;  %s122_s7 = scalar_lea.vmem [#allocation6], %s401_s23 }
  0x28   :  { %v116_v35 = vadd.f32 %v115_v32, %v112_v31  ;;  %v123_v36 = vld [vmem:[%s122_s7] sm:$0x1]  ;;  %s420_s8 = sld [smem:[#allocation2 + $0x303]]  ;;  %s126_s9 = scalar_lea.vmem [#allocation6], %s404_s22  ;;  %v176_v42 = vrot.slane %v104_v30, 5 }
  0x29   :  { %v127_v38 = vld [vmem:[%s126_s9] sm:$0x1]  ;;  %s423_s10 = sld [smem:[#allocation2 + $0x380]]  ;;  %s130_s11 = scalar_lea.vmem [#allocation6], %s406_s26 }
  0x2a   :  { %v120_v39 = vadd.f32 %v119_v33, %v116_v35  ;;  %v128_v40 = vadd.f32 %v127_v38, %v123_v36  ;;  %v131_v41 = vld [vmem:[%s130_s11] sm:$0x1]  ;;  %s284_s12 = sld [smem:[#allocation2 + $0x381]]  ;;  %s134_s13 = scalar_lea.vmem [#allocation6], %s409_s28  ;;  %v195_v52 = vsel %vm194_vm2, %v193_v44, %v176_v42 }
  0x2b   :  { %v135_v43 = vld [vmem:[%s134_s13] sm:$0x1]  ;;  %s427_s14 = sld [smem:[#allocation2 + $0x382]]  ;;  %s138_s15 = scalar_lea.vmem [#allocation6], %s412_s30 }
  0x2c   :  { %v132_v45 = vadd.f32 %v131_v41, %v128_v40  ;;  %v139_v46 = vld [vmem:[%s138_s15] sm:$0x1]  ;;  %s286_s16 = sld [smem:[#allocation2 + $0x383]]  ;;  %s142_s17 = scalar_lea.vmem [#allocation6], %s415_s4  ;;  %v179_v48 = vrot.slane %v120_v39, 4 }
  0x2d   :  { %v143_v47 = vld [vmem:[%s142_s17] sm:$0x1]  ;;  %s146_s18 = scalar_lea.vmem [#allocation6], %s417_s6  ;;  %s362_s23 = smov [#allocation7]  }
  0x2e   :  { %v136_v49 = vadd.f32 %v135_v43, %v132_v45  ;;  %v144_v50 = vadd.f32 %v143_v47, %v139_v46  ;;  %v147_v51 = vld [vmem:[%s146_s18] sm:$0x1]  ;;  %s150_s19 = scalar_lea.vmem [#allocation6], %s420_s8  ;;  %v197_v58 = vsel %vm196_vm3, %v195_v52, %v179_v48  ;;  %s211_s24 = sshll.u32 %s362_s23, 4  ;;  %s212_s24 = int_to_ptr.vmem [resolvable:$true] %s211_s24 }
  0x2f   :  { %v151_v53 = vld [vmem:[%s150_s19] sm:$0x1]  ;;  %s154_s0 = scalar_lea.vmem [#allocation6], %s423_s10  ;;  %s213_s26 = sshll.u32 %s440_s2, 4  ;;  %s214_s26 = int_to_ptr.hbm [resolvable:$true] %s213_s26 }
  0x30   :  { %v148_v54 = vadd.f32 %v147_v51, %v144_v50  ;;  %v155_v55 = vld [vmem:[%s154_s0] sm:$0x1]  ;;  %v182_v56 = vrot.slane %v136_v49, 3  ;;  %s158_s20 = scalar_lea.vmem [#allocation6], %s284_s12 }
  0x31   :  { %v159_v57 = vld [vmem:[%s158_s20] sm:$0x1]  ;;  %s162_s21 = scalar_lea.vmem [#allocation6], %s427_s14 }
  0x32   :  { %v152_v59 = vadd.f32 %v151_v53, %v148_v54  ;;  %v160_v60 = vadd.f32 %v159_v57, %v155_v55  ;;  %v163_v61 = vld [vmem:[%s162_s21] sm:$0x1]  ;;  %s166_s1 = scalar_lea.vmem [#allocation6], %s286_s16  ;;  %v199_v1 = vsel %vm198_vm4, %v197_v58, %v182_v56 }
  0x33   :  { %v167_v62 = vld [vmem:[%s166_s1] sm:$0x1] }
  0x34   :  { %v164_v63 = vadd.f32 %v163_v61, %v160_v60  ;;  %v185_v0 = vrot.slane %v152_v59, 2 }
  0x36   :  { %v168_v2 = vadd.f32 %v167_v62, %v164_v63  ;;  %v201_v3 = vsel %vm200_vm5, %v199_v1, %v185_v0 }
  0x38   :  { %v188_v4 = vrot.slane %v168_v2, 1 }
  0x3a   :  { %v203_v5 = vsel %vm202_vm6, %v201_v3, %v188_v4 }
  0x3b   :  { %205 = vst.msk [vmem:[#allocation7] sm:$0xff] %vm204_vm7, %v203_v5 }
  0x3c   :  { %216 = dma.vmem_to_hbm [thread:$0]  %s212_s24, 128, %s214_s26, [#allocation4]  }
  0x3d   :  { %356 = dma.done.wait [#allocation4], 128  }
  0x3e   :  { %357 = vsyncadd [#allocation4], 4294967168 }
  0x3f   :  { %221 = vsyncpa [#allocation3], 1 }
  0x40   :  { %222 = vsyncpa [#allocation4], 1 }
  0x41   :  { %223 = vsyncpa [#allocation5], 1 }

</bundles_post_ra>
